<compile_context>
chip_gen: v7x
topology: tpu7x:2x2x1
jax: 0.10.0
libtpu: 0.0.40
codegen_flags: <defaults>
</compile_context>

<pallas_src>
import jax
import jax.numpy as jnp
from jax.experimental import pallas as pl
from jax.experimental.pallas import tpu as pltpu


# ----------------------------------------------------------------------------
# Kernel
# ----------------------------------------------------------------------------
def _swish(x):
    # Swish(x) = x * sigmoid(x); sigmoid via one EUP tanh instead of
    # exp + reciprocal -> half the transcendental element-ops.
    return x * (0.5 * jnp.tanh(0.5 * x) + 0.5)


def mlp_encoder_z_kernel(xs_ref, ys_ref, w1x_ref, w1y_ref, b1_ref,
                         w2_ref, b2_ref, wh_ref, bh_ref,
                         mean_ref, std_ref):
    """One batch tile, feature-major: batch on the lane axis, vregs lane-dense.

    Shapes (tb = batch tile):
      xs_ref (x_dim, tb), ys_ref (y_dim, tb)
      w1x_ref (h0, x_dim), w1y_ref (h0, y_dim), b1_ref (h0, 1)
      w2_ref  (h2, h1),    b2_ref (h2, 1)
      wh_ref  (2z, h2),    bh_ref (2z, 1)      # fused [Wm ; Ws] heads
      mean_ref, std_ref (z, tb)
    """
    # Layer 1 without materializing concat([xs, ys]): W1x^T@xs^T + W1y^T@ys^T + b1
    h = (jnp.dot(w1x_ref[...], xs_ref[...], preferred_element_type=jnp.float32)
         + jnp.dot(w1y_ref[...], ys_ref[...], preferred_element_type=jnp.float32)
         + b1_ref[...])
    h = _swish(h)

    # Layer 2
    h = _swish(jnp.dot(w2_ref[...], h, preferred_element_type=jnp.float32)
               + b2_ref[...])

    # Fused heads: single MXU push producing [z_mean ; z_log_std] stacked on
    # the sublane axis; the split below is an 8-aligned sublane slice (free).
    heads = jnp.dot(wh_ref[...], h, preferred_element_type=jnp.float32) + bh_ref[...]
    z = mean_ref.shape[0]
    mean_ref[...] = heads[:z, :]
    # exp() only touches the log-std half: half the head EUP work, and no
    # +inf from exp(large z_mean) that a select would have to discard.
    std_ref[...] = jnp.exp(heads[z:, :])


# ----------------------------------------------------------------------------
# Tiling / wrapper
# ----------------------------------------------------------------------------
def _pick_tiling(n, batch_tile):
    """Per-generation batch tile + scoped-VMEM limit.

    Per-step VMEM ~ 600 B per batch element (double-buffered xs/ys/mean/std
    blocks + two live (32, tb) f32 hidden slabs), so:
      v5e/v6e (128 MiB VMEM): tb = 32768  -> ~20 MiB, limit 64 MiB
      v7x     ( 64 MiB VMEM): tb = 16384  -> ~10 MiB, limit 32 MiB (= default)
    """
    try:
        vmem_cap = pltpu.get_tpu_info().vmem_capacity_bytes
    except Exception:  # conservative fallback: assume the smallest budget
        vmem_cap = 64 << 20
    big_vmem = vmem_cap >= (96 << 20)
    tb = batch_tile if batch_tile is not None else (32768 if big_vmem else 16384)
    if tb >= n:
        tb = n                                  # single block covers the batch
    else:
        tb = max(128, (tb // 128) * 128)        # lane-aligned streaming tile
    vmem_limit = (64 << 20) if big_vmem else (32 << 20)
    return tb, vmem_limit


def mlp_encoder_z_t(xs_t, ys_t, packed_params, *, batch_tile=None):
    """Feature-major fast path.

    xs_t: (x_dim, n), ys_t: (y_dim, n)  ->  (z_mean_t, z_std_t), each (z_dim, n).
    Batch on the lane axis keeps every DMA block / vreg op / store lane-dense.
    """
    w1x_t, w1y_t, b1_t, w2_t, b2_t, wh_t, bh_t = packed_params
    x_dim, n = xs_t.shape
    y_dim = ys_t.shape[0]
    z_dim = wh_t.shape[0] // 2

    tb, vmem_limit = _pick_tiling(n, batch_tile)
    grid = (pl.cdiv(n, tb),)

    def stream(feat):
        # batch-streamed block: all features, one batch tile per grid step
        return pl.BlockSpec((feat, tb), lambda i: (0, i))

    def resident(shape):
        # same block every grid step -> stays VMEM-resident, no re-DMA
        return pl.BlockSpec(shape, lambda i: (0, 0))

    z_mean_t, z_std_t = pl.pallas_call(
        mlp_encoder_z_kernel,
        out_shape=(jax.ShapeDtypeStruct((z_dim, n), jnp.float32),
                   jax.ShapeDtypeStruct((z_dim, n), jnp.float32)),
        grid=grid,
        in_specs=[
            stream(x_dim),                 # xs^T
            stream(y_dim),                 # ys^T
            resident(w1x_t.shape),
            resident(w1y_t.shape),
            resident(b1_t.shape),
            resident(w2_t.shape),
            resident(b2_t.shape),
            resident(wh_t.shape),
            resident(bh_t.shape),
        ],
        out_specs=(stream(z_dim), stream(z_dim)),
        compiler_params=pltpu.CompilerParams(
            dimension_semantics=("parallel",),
            vmem_limit_bytes=vmem_limit),
    )(xs_t, ys_t, w1x_t, w1y_t, b1_t, w2_t, b2_t, wh_t, bh_t)
    return z_mean_t, z_std_t


def mlp_encoder_z(xs, ys, packed_params, *, batch_tile=None):
    """Module-semantics wrapper: xs (n, x_dim), ys (n, y_dim) -> (n, z_dim) x2.

    NOTE: pays one extra XLA transpose pass over the activations on each side
    of the kernel; producers that can hand over feature-major data should call
    mlp_encoder_z_t directly (the transposes eat part of the lane-density win
    on very large batches).
    """
    z_mean_t, z_std_t = mlp_encoder_z_t(xs.T, ys.T, packed_params,
                                        batch_tile=batch_tile)
    return z_mean_t.T, z_std_t.T


# ----------------------------------------------------------------------------
# Params / reference
# ----------------------------------------------------------------------------
def pack_params_t(params, x_dim):
    """One-time repacking into feature-major kernel operands.

    `params` weights are stored (in, out) == torch_weight.T (as init_params
    does).  If loading real PyTorch weights (out, in), transpose them to
    (in, out) first — the x_dim split below is along the *input* axis.
    """
    w1, b1, w2, b2, wm, bm, ws, bs = params
    w1x_t = w1[:x_dim].T                              # (h0, x_dim)
    w1y_t = w1[x_dim:].T                              # (h0, y_dim)
    b1_t = b1.T                                       # (h0, 1)
    w2_t = w2.T                                       # (h2, h1)
    b2_t = b2.T                                       # (h2, 1)
    wh_t = jnp.concatenate([wm.T, ws.T], axis=0)      # (2z, h) fused heads
    bh_t = jnp.concatenate([bm.T, bs.T], axis=0)      # (2z, 1)
    return (w1x_t, w1y_t, b1_t, w2_t, b2_t, wh_t, bh_t)


def init_params(key, x_dim, y_dim, z_dim, h_dims):
    """Deterministic synthetic init. Weights stored (in, out) == torch W.T."""
    keys = jax.random.split(key, 8)
    d_in = x_dim + y_dim

    def lin(kw, kb, fan_in, fan_out):
        scale = 1.0 / jnp.sqrt(fan_in)
        w = jax.random.uniform(kw, (fan_in, fan_out), jnp.float32, -scale, scale)
        b = jax.random.uniform(kb, (1, fan_out), jnp.float32, -scale, scale)
        return w, b

    w1, b1 = lin(keys[0], keys[1], d_in, h_dims[0])
    w2, b2 = lin(keys[2], keys[3], h_dims[1], h_dims[2])
    wm, bm = lin(keys[4], keys[5], h_dims[-1], z_dim)
    ws, bs = lin(keys[6], keys[7], h_dims[-1], z_dim)
    return (w1, b1, w2, b2, wm, bm, ws, bs)


def reference_forward(xs, ys, params):
    """Pure-JAX reference matching the PyTorch module semantics."""
    w1, b1, w2, b2, wm, bm, ws, bs = params

    def swish(x):
        return x * (1.0 / (1.0 + jnp.exp(-x)))

    xy = jnp.concatenate([xs, ys], axis=-1)
    h = swish(xy @ w1 + b1)
    h = swish(h @ w2 + b2)
    z_mean = h @ wm + bm
    z_log_std = h @ ws + bs
    return z_mean, jnp.exp(z_log_std)


# ----------------------------------------------------------------------------
# Demo / self-check
# ----------------------------------------------------------------------------
if __name__ == "__main__":
    x_dim, y_dim, z_dim = 16, 4, 8
    h_dims = [32, 32, 32]

    key = jax.random.PRNGKey(0)
    k_p, k1, k2, k3, k4 = jax.random.split(key, 5)

    params = init_params(k_p, x_dim, y_dim, z_dim, h_dims)
    packed = pack_params_t(params, x_dim)

    # --- Check 1: feature-major fast path, streamed grid (multi-step + partial
    #     last tile: n=1000, tile=256 -> 4 steps, last block 232 lanes).
    n1 = 1000
    xs1 = jax.random.normal(k1, (n1, x_dim), jnp.float32)
    ys1 = jax.nn.one_hot(
        jax.random.randint(k2, (n1,), 0, y_dim), y_dim).astype(jnp.float32)

    zm1_t, zs1_t = mlp_encoder_z_t(xs1.T, ys1.T, packed, batch_tile=256)
    jax.block_until_ready((zm1_t, zs1_t))

    rm1, rs1 = reference_forward(xs1, ys1, params)
    assert zm1_t.shape == (z_dim, n1) and zs1_t.shape == (z_dim, n1)
    assert jnp.allclose(zm1_t.T, rm1, atol=2e-5, rtol=2e-5)
    assert jnp.allclose(zs1_t.T, rs1, atol=2e-5, rtol=2e-5)

    # --- Check 2: module-semantics wrapper, small batch, single grid step.
    n2 = 8
    xs2 = jax.random.normal(k3, (n2, x_dim), jnp.float32)
    ys2 = jax.nn.one_hot(
        jax.random.randint(k4, (n2,), 0, y_dim), y_dim).astype(jnp.float32)

    zm2, zs2 = mlp_encoder_z(xs2, ys2, packed)
    jax.block_until_ready((zm2, zs2))

    rm2, rs2 = reference_forward(xs2, ys2, params)
    assert zm2.shape == (n2, z_dim) and zs2.shape == (n2, z_dim)
    assert jnp.allclose(zm2, rm2, atol=2e-5, rtol=2e-5)
    assert jnp.allclose(zs2, rs2, atol=2e-5, rtol=2e-5)

    print("KERNEL_OK")
</pallas_src>

<mosaic_0001>
module attributes {stable_mosaic.version = 11 : i64} {
  func.func @mlp_encoder_z_kernel(%arg0: i32, %arg1: memref<16x256xf32, #tpu.memory_space<vmem>>, %arg2: memref<4x256xf32, #tpu.memory_space<vmem>>, %arg3: memref<32x16xf32, #tpu.memory_space<vmem>>, %arg4: memref<32x4xf32, #tpu.memory_space<vmem>>, %arg5: memref<32x1xf32, #tpu.memory_space<vmem>>, %arg6: memref<32x32xf32, #tpu.memory_space<vmem>>, %arg7: memref<32x1xf32, #tpu.memory_space<vmem>>, %arg8: memref<16x32xf32, #tpu.memory_space<vmem>>, %arg9: memref<16x1xf32, #tpu.memory_space<vmem>>, %arg10: memref<8x256xf32, #tpu.memory_space<vmem>>, %arg11: memref<8x256xf32, #tpu.memory_space<vmem>>) attributes {dimension_semantics = [#tpu.dimension_semantics<parallel>], iteration_bounds = array<i64: 4>, scalar_prefetch = 0 : i64, scratch_operands = 0 : i64, tpu.core_type = #tpu.core_type<tc>, window_params = [{transform_indices = @transform_0, window_bounds = array<i64: 16, 256>}, {transform_indices = @transform_1, window_bounds = array<i64: 4, 256>}, {pipeline_mode = #tpu.pipeline_mode<synchronous>, transform_indices = @transform_2, window_bounds = array<i64: 32, 16>}, {pipeline_mode = #tpu.pipeline_mode<synchronous>, transform_indices = @transform_3, window_bounds = array<i64: 32, 4>}, {pipeline_mode = #tpu.pipeline_mode<synchronous>, transform_indices = @transform_4, window_bounds = array<i64: 32, 1>}, {pipeline_mode = #tpu.pipeline_mode<synchronous>, transform_indices = @transform_5, window_bounds = array<i64: 32, 32>}, {pipeline_mode = #tpu.pipeline_mode<synchronous>, transform_indices = @transform_6, window_bounds = array<i64: 32, 1>}, {pipeline_mode = #tpu.pipeline_mode<synchronous>, transform_indices = @transform_7, window_bounds = array<i64: 16, 32>}, {pipeline_mode = #tpu.pipeline_mode<synchronous>, transform_indices = @transform_8, window_bounds = array<i64: 16, 1>}, {transform_indices = @transform_9, window_bounds = array<i64: 8, 256>}, {transform_indices = @transform_10, window_bounds = array<i64: 8, 256>}]} {
    %c0 = arith.constant 0 : index
    %c0_0 = arith.constant 0 : index
    %0 = vector.load %arg3[%c0, %c0_0] : memref<32x16xf32, #tpu.memory_space<vmem>>, vector<32x16xf32>
    %c0_1 = arith.constant 0 : index
    %c0_2 = arith.constant 0 : index
    %1 = vector.load %arg1[%c0_1, %c0_2] : memref<16x256xf32, #tpu.memory_space<vmem>>, vector<16x256xf32>
    %cst = arith.constant dense<0.000000e+00> : vector<32x256xf32>
    %2 = tpu.matmul %0, %1, %cst {dimension_numbers = #tpu.dot_dimension_numbers<[1], [0], [0], [1], [0, 0, 1, 1], [], []>} : vector<32x16xf32>, vector<16x256xf32>, vector<32x256xf32> -> vector<32x256xf32>
    %c0_3 = arith.constant 0 : index
    %c0_4 = arith.constant 0 : index
    %3 = vector.load %arg4[%c0_3, %c0_4] : memref<32x4xf32, #tpu.memory_space<vmem>>, vector<32x4xf32>
    %c0_5 = arith.constant 0 : index
    %c0_6 = arith.constant 0 : index
    %4 = vector.load %arg2[%c0_5, %c0_6] : memref<4x256xf32, #tpu.memory_space<vmem>>, vector<4x256xf32>
    %cst_7 = arith.constant dense<0.000000e+00> : vector<32x256xf32>
    %5 = tpu.matmul %3, %4, %cst_7 {dimension_numbers = #tpu.dot_dimension_numbers<[1], [0], [0], [1], [0, 0, 1, 1], [], []>} : vector<32x4xf32>, vector<4x256xf32>, vector<32x256xf32> -> vector<32x256xf32>
    %6 = arith.addf %2, %5 : vector<32x256xf32>
    %c0_8 = arith.constant 0 : index
    %c0_9 = arith.constant 0 : index
    %7 = vector.load %arg5[%c0_8, %c0_9] : memref<32x1xf32, #tpu.memory_space<vmem>>, vector<32x1xf32>
    %8 = vector.broadcast %7 : vector<32x1xf32> to vector<32x256xf32>
    %9 = arith.addf %6, %8 : vector<32x256xf32>
    %cst_10 = arith.constant 5.000000e-01 : f32
    %10 = vector.broadcast %cst_10 : f32 to vector<32x256xf32>
    %11 = arith.mulf %10, %9 : vector<32x256xf32>
    %12 = math.tanh %11 : vector<32x256xf32>
    %cst_11 = arith.constant 5.000000e-01 : f32
    %13 = vector.broadcast %cst_11 : f32 to vector<32x256xf32>
    %14 = arith.mulf %13, %12 : vector<32x256xf32>
    %cst_12 = arith.constant 5.000000e-01 : f32
    %15 = vector.broadcast %cst_12 : f32 to vector<32x256xf32>
    %16 = arith.addf %14, %15 : vector<32x256xf32>
    %17 = arith.mulf %9, %16 : vector<32x256xf32>
    %c0_13 = arith.constant 0 : index
    %c0_14 = arith.constant 0 : index
    %18 = vector.load %arg6[%c0_13, %c0_14] : memref<32x32xf32, #tpu.memory_space<vmem>>, vector<32x32xf32>
    %cst_15 = arith.constant dense<0.000000e+00> : vector<32x256xf32>
    %19 = tpu.matmul %18, %17, %cst_15 {dimension_numbers = #tpu.dot_dimension_numbers<[1], [0], [0], [1], [0, 0, 1, 1], [], []>} : vector<32x32xf32>, vector<32x256xf32>, vector<32x256xf32> -> vector<32x256xf32>
    %c0_16 = arith.constant 0 : index
    %c0_17 = arith.constant 0 : index
    %20 = vector.load %arg7[%c0_16, %c0_17] : memref<32x1xf32, #tpu.memory_space<vmem>>, vector<32x1xf32>
    %21 = vector.broadcast %20 : vector<32x1xf32> to vector<32x256xf32>
    %22 = arith.addf %19, %21 : vector<32x256xf32>
    %cst_18 = arith.constant 5.000000e-01 : f32
    %23 = vector.broadcast %cst_18 : f32 to vector<32x256xf32>
    %24 = arith.mulf %23, %22 : vector<32x256xf32>
    %25 = math.tanh %24 : vector<32x256xf32>
    %cst_19 = arith.constant 5.000000e-01 : f32
    %26 = vector.broadcast %cst_19 : f32 to vector<32x256xf32>
    %27 = arith.mulf %26, %25 : vector<32x256xf32>
    %cst_20 = arith.constant 5.000000e-01 : f32
    %28 = vector.broadcast %cst_20 : f32 to vector<32x256xf32>
    %29 = arith.addf %27, %28 : vector<32x256xf32>
    %30 = arith.mulf %22, %29 : vector<32x256xf32>
    %c0_21 = arith.constant 0 : index
    %c0_22 = arith.constant 0 : index
    %31 = vector.load %arg8[%c0_21, %c0_22] : memref<16x32xf32, #tpu.memory_space<vmem>>, vector<16x32xf32>
    %cst_23 = arith.constant dense<0.000000e+00> : vector<16x256xf32>
    %32 = tpu.matmul %31, %30, %cst_23 {dimension_numbers = #tpu.dot_dimension_numbers<[1], [0], [0], [1], [0, 0, 1, 1], [], []>} : vector<16x32xf32>, vector<32x256xf32>, vector<16x256xf32> -> vector<16x256xf32>
    %c0_24 = arith.constant 0 : index
    %c0_25 = arith.constant 0 : index
    %33 = vector.load %arg9[%c0_24, %c0_25] : memref<16x1xf32, #tpu.memory_space<vmem>>, vector<16x1xf32>
    %34 = vector.broadcast %33 : vector<16x1xf32> to vector<16x256xf32>
    %35 = arith.addf %32, %34 : vector<16x256xf32>
    %36 = vector.extract_strided_slice %35 {offsets = [0, 0], sizes = [8, 256], strides = [1, 1]} : vector<16x256xf32> to vector<8x256xf32>
    %c0_26 = arith.constant 0 : index
    %c0_27 = arith.constant 0 : index
    %37 = vector.load %arg10[%c0_26, %c0_27] : memref<8x256xf32, #tpu.memory_space<vmem>>, vector<8x256xf32>
    tpu.vector_store %arg10[%c0_26, %c0_27], %36 {strides = array<i32>} : memref<8x256xf32, #tpu.memory_space<vmem>>, vector<8x256xf32>,
    %38 = vector.extract_strided_slice %35 {offsets = [8, 0], sizes = [8, 256], strides = [1, 1]} : vector<16x256xf32> to vector<8x256xf32>
    %39 = math.exp %38 : vector<8x256xf32>
    %c0_28 = arith.constant 0 : index
    %c0_29 = arith.constant 0 : index
    %40 = vector.load %arg11[%c0_28, %c0_29] : memref<8x256xf32, #tpu.memory_space<vmem>>, vector<8x256xf32>
    tpu.vector_store %arg11[%c0_28, %c0_29], %39 {strides = array<i32>} : memref<8x256xf32, #tpu.memory_space<vmem>>, vector<8x256xf32>,
    return
  }
  func.func @transform_0(%arg0: i32) -> (i32, i32) {
    %c0_i32 = arith.constant 0 : i32
    %c0_i32_0 = arith.constant 0 : i32
    return %c0_i32, %arg0 : i32, i32
  }
  func.func @transform_1(%arg0: i32) -> (i32, i32) {
    %c0_i32 = arith.constant 0 : i32
    %c0_i32_0 = arith.constant 0 : i32
    return %c0_i32, %arg0 : i32, i32
  }
  func.func @transform_2(%arg0: i32) -> (i32, i32) {
    %c0_i32 = arith.constant 0 : i32
    %c0_i32_0 = arith.constant 0 : i32
    %c0_i32_1 = arith.constant 0 : i32
    return %c0_i32, %c0_i32_0 : i32, i32
  }
  func.func @transform_3(%arg0: i32) -> (i32, i32) {
    %c0_i32 = arith.constant 0 : i32
    %c0_i32_0 = arith.constant 0 : i32
    %c0_i32_1 = arith.constant 0 : i32
    return %c0_i32, %c0_i32_0 : i32, i32
  }
  func.func @transform_4(%arg0: i32) -> (i32, i32) {
    %c0_i32 = arith.constant 0 : i32
    %c0_i32_0 = arith.constant 0 : i32
    %c0_i32_1 = arith.constant 0 : i32
    return %c0_i32, %c0_i32_0 : i32, i32
  }
  func.func @transform_5(%arg0: i32) -> (i32, i32) {
    %c0_i32 = arith.constant 0 : i32
    %c0_i32_0 = arith.constant 0 : i32
    %c0_i32_1 = arith.constant 0 : i32
    return %c0_i32, %c0_i32_0 : i32, i32
  }
  func.func @transform_6(%arg0: i32) -> (i32, i32) {
    %c0_i32 = arith.constant 0 : i32
    %c0_i32_0 = arith.constant 0 : i32
    %c0_i32_1 = arith.constant 0 : i32
    return %c0_i32, %c0_i32_0 : i32, i32
  }
  func.func @transform_7(%arg0: i32) -> (i32, i32) {
    %c0_i32 = arith.constant 0 : i32
    %c0_i32_0 = arith.constant 0 : i32
    %c0_i32_1 = arith.constant 0 : i32
    return %c0_i32, %c0_i32_0 : i32, i32
  }
  func.func @transform_8(%arg0: i32) -> (i32, i32) {
    %c0_i32 = arith.constant 0 : i32
    %c0_i32_0 = arith.constant 0 : i32
    %c0_i32_1 = arith.constant 0 : i32
    return %c0_i32, %c0_i32_0 : i32, i32
  }
  func.func @transform_9(%arg0: i32) -> (i32, i32) {
    %c0_i32 = arith.constant 0 : i32
    %c0_i32_0 = arith.constant 0 : i32
    return %c0_i32, %arg0 : i32, i32
  }
  func.func @transform_10(%arg0: i32) -> (i32, i32) {
    %c0_i32 = arith.constant 0 : i32
    %c0_i32_0 = arith.constant 0 : i32
    return %c0_i32, %arg0 : i32, i32
  }
}

</mosaic_0001>

<bundles_post_ra>
// kernel: tpu_custom_call.1
= control target key start
LH: loop header
LB: loop body
LE: loop exit
PB: predicated region body
PF: predicated region fallthrough
CT: control target
= control target key end

     0   :  { %16 = vsyncpa [#allocation4], 0  ;;  %s1795_s0 = inlined_call_operand.vmem [shape: f32[16,1000], index: 0, kind: input, shape index: {}]   ;;  %s1796_s1 = inlined_call_operand.vmem [shape: f32[4,1000], index: 1, kind: input, shape index: {}]   ;;  %s1797_s2 = inlined_call_operand.vmem [shape: f32[32,16], index: 2, kind: input, shape index: {}]   ;;  %s1798_s3 = inlined_call_operand.vmem [shape: f32[32,4], index: 3, kind: input, shape index: {}]   ;;  %s1799_s4 = inlined_call_operand.vmem [shape: f32[32,1], index: 4, kind: input, shape index: {}]   ;;  %s1800_s5 = inlined_call_operand.hbm [shape: f32[32,32], index: 5, kind: input, shape index: {}]   ;;  %s1801_s6 = inlined_call_operand.vmem [shape: f32[32,1], index: 6, kind: input, shape index: {}]   ;;  %s1802_s7 = inlined_call_operand.vmem [shape: f32[16,32], index: 7, kind: input, shape index: {}]   ;;  %s1803_s8 = inlined_call_operand.vmem [shape: f32[16,1], index: 8, kind: input, shape index: {}]   ;;  %s1804_s9 = inlined_call_operand.hbm [shape: f32[8,1000], index: 9, kind: output, shape index: {0}]   ;;  %s1805_s10 = inlined_call_operand.hbm [shape: f32[8,1000], index: 10, kind: output, shape index: {1}]  }
   0x1   :  { %17 = vsyncpa [#allocation5], 0 }
   0x2   :  { %19 = vsyncpa [#allocation5 + $0x1], 0 }
   0x3   :  { %20 = vsyncpa [#allocation8], 0 }
   0x4   :  { %22 = vsyncpa [#allocation8 + $0x1], 0  ;;  %s1518_s13 = smov 0   ;;  %s1520_s14 = smov 0  }
   0x5   :  { %s1522_s15 = smov 0   ;;  %s1524_s16 = smov 0  }
   0x6 LB: > { %s1539_s17 = sadd.s32 4294967295, %s1454_s16   ;;  %s1161_s18 = sadd.s32 4294967294, %s1454_s16   ;;  %s1454_s16 = sphi %s1524_s16, %s1827_s16   ;;  %s1450_s15 = sphi %s1522_s15, %s1831_s15   ;;  %s1446_s14 = sphi %s1520_s14, %s1830_s14   ;;  %s1442_s13 = sphi %s1518_s13, %s1829_s13  }
   0x7   : > { %s1543_s19 = sadd.s32 1, %s1454_s16   ;;  %s35_s20 = sadd.s32 1, %s1450_s15 }
   0x8   : > { %1812 = sst [smem:[#allocation12_spill]] %s1543_s19  ;;  %s32_s21 = ssub.s32 %s1454_s16, %s1543_s19 }
   0x9   : > { %p42_p0 = scmp.ne.s32.totalorder %s1450_s15, %s1446_s14  ;;  %p33_p1 = scmp.eq.s32.totalorder %s32_s21, 0 }
   0xa   : > { %p43_p2 = scmp.eq.s32.totalorder %s1454_s16, 0  ;;  %p245_p3 = scmp.eq.s32.totalorder %s1539_s17, 3 }
   0xb   : > { %p250_p4 = scmp.ne.s32.totalorder %s1446_s14, %s1442_s13  ;;  %p251_p7 = scmp.eq.s32.totalorder %s1161_s18, 3 }
   0xc   : > { %s1555_s22 = scalar_select %p33_p1, %s1450_s15, %s35_s20  }
   0xd   : > { %p1557_p5 = por %p43_p2, %p42_p0  ;;  %p1561_p6 = por %p245_p3, %p42_p0 }
   0xe   : > { %1813 = sst [smem:[#allocation13_spill]] %s1555_s22  ;;  %p1162_p8 = scmp.ge.s32.totalorder %s1454_s16, 1 }
   0xf   : > { %s1814_s23 = scalar_select %p1557_p5, 1, 0 }
  0x10   : > { %s1815_s24 = scalar_select %p1561_p6, 1, 0 }
  0x11   : > { %p284_p9 = scmp.lt.s32.totalorder %s1454_s16, 5  ;;  %p1567_p10 = por %p251_p7, %p250_p4 }
  0x12   : > { %p1806_p11 = scmp.eq.s32.totalorder %s1539_s17, 0  ;;  %s1456_s27 = smov [#allocation3]  }
  0x13   : > { %s1816_s25 = scalar_select %p1567_p10, 1, 0 }
  0x14   : > { %p1572_p12 = pnand %p1162_p8, %p284_p9  ;;  %s305_s28 = sshll.u32 %s1456_s27, 4  ;;  %s306_s28 = int_to_ptr.vmem [resolvable:$true] %s305_s28 }
  0x15   : > { %1817 = sst [smem:[#allocation14_spill]] %s1816_s25  ;;  %s1328_s12 = scalar_lea.hbm %s1800_s5, 512 }
  0x16   : > { %s1818_s26 = scalar_select %p1572_p12, 1, 0 }
  0x17   : > { %p1238_p13 = pneg %p1572_p12  ;;  %p1329_p1 = scmp.ne.s32.totalorder %s1800_s5, %s1328_s12 }
  0x18   : > { %p1335_p7 = scmp.lt.u32.totalorder %s1328_s12, %s1800_s5 }
  0x19   : > { %p1580_p0 = pnand %p1806_p11, %p1238_p13 }
  0x1b   : > { %p1330_p2 = pneg %p1580_p0 }
  0x1d   : > { %p1331_p3 = pnand %p1330_p2, %p1329_p1 }
  0x1f   : > { %p1332_p4 = pneg %p1331_p3 }
  0x21   : > { %p1337_p8 = pnand %p1335_p7, %p1332_p4 }
  0x23   : > { %1340 = shalt.err (!%p1337_p8)
}
  0x24   : > { %s1341_s22 = scalar_lea.vmem %s306_s28, 512  ;;  %p1349_p10 = scmp.lt.s32.totalorder %s306_s28, %s306_s28 }
  0x25   : > { %p1342_p9 = scmp.ne.s32.totalorder %s306_s28, %s1341_s22  ;;  %p1350_p6 = scmp.lt.s32.totalorder %s1341_s22, %s1341_s22 }
  0x27   : > { %p1344_p13 = pnand %p1342_p9, %p1330_p2  ;;  %p1351_p12 = por %p1350_p6, %p1349_p10 }
  0x29   : > { %p1345_p11 = pneg %p1344_p13 }
  0x2b   : > { %p1352_p5 = pnand %p1351_p12, %p1345_p11 }
  0x2d   : > { %1355 = shalt.err (!%p1352_p5)
}
  0x2e   : > { %s1457_s30 = smov 128   ;;  %s1458_s11 = smov 8  }
  0x2f   : > { %1241 = dma.hbm_to_vmem [thread:$0]  (!%p1580_p0), %s1800_s5, 512, %s306_s28, [#allocation4], %s1457_s30, %s1457_s30, %s1458_s11  }
  0x30   : > { %p1164_p1 = scmp.ge.s32.totalorder %s1454_s16, 4 }
  0x31   : > { %p1820_p3 = scmp.ne.s32.totalorder (!%p1164_p1), %s1814_s23, 0 }
  0x32   : > { %324 = sbr.rel (%p1164_p1) target bundleno = 64 (0x40), region = 44 }
  0x39   : > { %327 = sbr.rel (!%p1820_p3) target bundleno = 64 (0x40), region = 48  ;;  %s329_s22 = sand.u32 (%p1820_p3), 1, %s1450_s15  }
  0x3a   : > { %s1199_s12 = sshll.u32 (%p1820_p3), %s1454_s16, 4  ;;  %s1165_s21 = sshll.u32 (%p1820_p3), %s329_s22, 5 }
  0x3b   : > { %s334_s25 = scalar_lea.vmem (%p1820_p3), %s1795_s0, %s1199_s12  ;;  %s331_s29 = scalar_lea.vmem (%p1820_p3), [#allocation2], %s1165_s21 }
  0x3c   : > { %v347_v0 = vld [vmem:[%s334_s25] sm:$0xff] (%p1820_p3)  ;;  %v349_v1 = vld [vmem:[%s334_s25 + $0x8] sm:$0xff] (%p1820_p3) }
  0x3d   : > { %v351_v2 = vld [vmem:[%s334_s25 + $0x40] sm:$0xff] (%p1820_p3)  ;;  %348 = vst [vmem:[%s331_s29] sm:$0xff] (%p1820_p3), %v347_v0  ;;  %350 = vst [vmem:[%s331_s29 + $0x8] sm:$0xff] (%p1820_p3), %v349_v1  ;;  %v353_v3 = vld [vmem:[%s334_s25 + $0x48] sm:$0xff] (%p1820_p3) }
  0x3e   : > { %352 = vst [vmem:[%s331_s29 + $0x10] sm:$0xff] (%p1820_p3), %v351_v2  ;;  %354 = vst [vmem:[%s331_s29 + $0x18] sm:$0xff] (%p1820_p3), %v353_v3 }
  0x40 PF: > { %p1821_p5 = scmp.ne.s32.totalorder %s1818_s26, 0 }
  0x41   : > { %s1611_s23 = sand.u32 (!%p1821_p5), 1, %s1446_s14   ;;  %p1822_p6 = scmp.eq.s32.totalorder (!%p1821_p5), %s1539_s17, 0 }
  0x42   : > { %372 = sbr.rel (%p1821_p5) target bundleno = 863 (0x35f), region = 75  ;;  %s1169_s19 = sshll.u32 (!%p1821_p5), %s1611_s23, 5 }
  0x43   : > { %s377_s28 = scalar_lea.vmem (!%p1821_p5), [#allocation2], %s1169_s19 }
  0x49   : > { %1429 = dma.done.wait (%p1822_p6), [#allocation4], 512   ;;  %p1823_p10 = pmov %p1822_p6 }
  0x4a   : > { %s1173_s25 = sshll.u32 %s1539_s17, 1  ;;  %v1459_v4 = vmov 0.0   ;;  %v1460_v5 = vmov 0   ;;  %vm463_vm0 = vcmask 1043456   ;;  %v440_v8 = vld [vmem:[%s377_s28 + $0x8] sm:$0xff]  ;;  %v442_v9 = vld [vmem:[%s377_s28 + $0x18] sm:$0xff] }
  0x4b   : > { %1431 = vsyncadd (%p1823_p10), [#allocation4], 4294966784  ;;  %p428_p11 = scmp.lt.s32.totalorder %s1173_s25, 7  ;;  %532 = vmatprep.mubr.f32.mxu0 %v1459_v4  ;;  %836 = vmatprep.mubr.f32.mxu1 %v1459_v4  ;;  %v439_v10 = vld [vmem:[%s377_s28] sm:$0xff]  ;;  %vm450_vm1 = vcmask 31744   ;;  %v1202_v12 = vpack.c.bf16 %v442_v9, %v440_v8  ;;  %v441_v13 = vld [vmem:[%s377_s28 + $0x10] sm:$0xff] }
  0x4c   : > { %1289 = vset.pattern.permute.xlu0 %v1460_v5  ;;  %1290 = vset.pattern.permute.xlu1 %v1460_v5  ;;  %v443_v11 = vld [vmem:[%s1798_s3] sm:$0xff]  ;;  %v1204_v14 = vpack.c.bf16 %v441_v13, %v439_v10  ;;  %v661_v16 = vld [vmem:[%s1799_s4 + $0x10] sm:$0xff]  ;;  %v444_v17 = vld [vmem:[%s1798_s3 + $0x8] sm:$0xff]  ;;  %vm557_vm2 = vcmask 130048   ;;  %vm759_vm3 = vcmask 261120   ;;  %s1171_s22 = sshll.u32 %s1611_s23, 4 }
  0x4d   : > { %s1833_s25 = smov (!%p428_p11, %s1173_s25), 7  ;;  %v659_v15 = vld [vmem:[%s1799_s4] sm:$0xff]  ;;  %675 = vperm.xlu1 %1290, %v661_v16   ;;  %v660_v18 = vld [vmem:[%s1799_s4 + $0x8] sm:$0xff]  ;;  %v662_v19 = vld [vmem:[%s1799_s4 + $0x18] sm:$0xff]  ;;  %s1200_s12 = sshll.u32 %s1539_s17, 8 }
  0x4e   : > { %s1174_s26 = sshll.u32 %s1833_s25, 2  ;;  %665 = vperm.xlu0 %1289, %v659_v15   ;;  %v445_v20 = vld [vmem:[%s1798_s3 + $0x10] sm:$0xff]  ;;  %v735_v21 = vld [vmem:[%s1801_s6] sm:$0xff]  ;;  %v736_v22 = vld [vmem:[%s1801_s6 + $0x8] sm:$0xff]  ;;  %s418_s21 = scalar_lea.vmem [#allocation6], %s1171_s22 }
  0x4f   : > { %s431_s18 = scalar_lea.vmem %s1796_s1, %s1174_s26  ;;  %v446_v23 = vld [vmem:[%s1798_s3 + $0x18] sm:$0xff]  ;;  %v737_v24 = vld [vmem:[%s1801_s6 + $0x10] sm:$0xff]  ;;  %v435_v26 = vld [vmem:[%s1797_s2] sm:$0xff]  ;;  %s1026_s27 = sshll.u32 %s418_s21, 4  ;;  %s1721_s27 = int_to_ptr.vmem [resolvable:$true] %s1026_s27 }
  0x50   : > { %v447_v6 = vld [vmem:[%s431_s18] sm:$0xff]  ;;  %v738_v25 = vld [vmem:[%s1801_s6 + $0x18] sm:$0xff]  ;;  %v904_v27 = vld [vmem:[%s1803_s8 + $0x8] sm:$0xff]  ;;  %s1719_s25 = scalar_lea.hbm %s1804_s9, %s1200_s12  ;;  %s1007_s28 = scalar_lea.sflag [#allocation5], %s1611_s23 }
  0x51   : > { %v449_v7 = vcombine.high %v447_v6, %v447_v6  ;;  %680 = vperm.xlu1 %1290, %v662_v19   ;;  %v903_v28 = vld [vmem:[%s1803_s8] sm:$0xff]  ;;  %v436_v29 = vld [vmem:[%s1797_s2 + $0x8] sm:$0xff]  ;;  %v437_v30 = vld [vmem:[%s1797_s2 + $0x10] sm:$0xff]  ;;  %s1356_s26 = scalar_lea.vmem %s1721_s27, 256  ;;  %p1824_p0 = scmp.ne.s32.totalorder %s1815_s24, 0 }
  0x52   : > { %670 = vperm.xlu0 %1289, %v660_v18   ;;  %v438_v31 = vld [vmem:[%s1797_s2 + $0x18] sm:$0xff]  ;;  %p1357_p12 = scmp.ne.s32.totalorder %s1721_s27, %s1356_s26  ;;  %s1461_s30 = smov [#allocation6]  }
  0x53   : > { %1175 = vmatprep.subr.msk.mxu0 %vm463_vm0, %v449_v7  ;;  %s1360_s11 = sshll.u32 %s1461_s30, 4  ;;  %s1361_s11 = int_to_ptr.vmem [resolvable:$false] %s1360_s11 }
  0x54   : > { %1176 = vmatpush1.msk.msra.mxu0 %vm463_vm0, %v447_v6  ;;  %p1358_p2 = pnand %p1357_p12, %p1824_p0  ;;  %s1362_s18 = scalar_lea.vmem %s1361_s11, 512 }
  0x55   : > { %1177 = vmatmul.mubr.msk.f32.vlgmr.msra.gmra.mrb[0].mxu0 %vm450_vm1, %v443_v11  ;;  %1203 = vmatprep.subr.bf16.mxu0 %v1202_v12  ;;  %p1363_p7 = scmp.lt.s32.totalorder %s1721_s27, %s1361_s11  ;;  %p1364_p8 = scmp.lt.s32.totalorder %s1362_s18, %s1356_s26 }
  0x56   : > { %538 = vmatprep.mubr.f32.mxu0 %v1459_v4  ;;  %1205 = vmatpush1.bf16.msra.mxu0 %v1204_v14  ;;  %p1359_p4 = pneg %p1358_p2 }
  0x57   : > { %741 = vperm.xlu0 %1289, %v735_v21   ;;  %746 = vperm.xlu1 %1290, %v736_v22   ;;  %p1365_p9 = por %p1364_p8, %p1363_p7 }
  0x59   : > { %1178 = vmatmul.mubr.msk.f32.gmra.mrb[2].mxu0 %vm450_vm1, %v444_v17  ;;  %p1366_p13 = pnand %p1365_p9, %p1359_p4 }
  0x5a   : > { %544 = vmatprep.mubr.f32.mxu0 %v1459_v4 }
  0x5b   : > { %751 = vperm.xlu0 %1289, %v737_v24   ;;  %756 = vperm.xlu1 %1290, %v738_v25  }
  0x5d   : > { %1179 = vmatmul.mubr.msk.f32.gmra.mrb[4].mxu0 %vm450_vm1, %v445_v20 }
  0x5e   : > { %550 = vmatprep.mubr.f32.mxu0 %v1459_v4 }
  0x5f   : > { %912 = vperm.xlu0 %1289, %v904_v27   ;;  %907 = vperm.xlu1 %1290, %v903_v28  }
  0x61   : > { %1180 = vmatmul.mubr.msk.f32.gmra.mrb[6].mxu0 %vm450_vm1, %v446_v23 }
  0x62   : > { %634 = vmatprep.mubr.f32.mxu0 %v1459_v4 }
  0x65   : > { %1181 = vmatmul.mubr.msk.f32.vlgmr.msra.gmra.mrb[0].mxu0 %vm557_vm2, %v435_v26 }
  0x66   : > { %640 = vmatprep.mubr.f32.mxu0 %v1459_v4 }
  0x69   : > { %1182 = vmatmul.mubr.msk.f32.gmra.mrb[2].mxu0 %vm557_vm2, %v436_v29 }
  0x6a   : > { %646 = vmatprep.mubr.f32.mxu0 %v1459_v4 }
  0x6d   : > { %1183 = vmatmul.mubr.msk.f32.gmra.mrb[4].mxu0 %vm557_vm2, %v437_v30 }
  0x6e   : > { %652 = vmatprep.mubr.f32.mxu0 %v1459_v4 }
  0x71   : > { %1184 = vmatmul.mubr.msk.f32.gmra.mrb[6].mxu0 %vm557_vm2, %v438_v31 }
  0xcc   : > { %v676_v43 = vpop.permute.xlu1 %675 }
  0xcd   : > { %v666_v32 = vpop.permute.xlu0 %665 }
  0xd0   : > { %v681_v52 = vpop.permute.xlu1 %680 }
  0xd1   : > { %v671_v38 = vpop.permute.xlu0 %670 }
 0x138   : > { %v636_v33 = vpop.f32.mrb[0].mxu0 }
 0x139   : > { %v683_v34 = vadd.f32 %v666_v32, %v636_v33  ;;  %v638_v35 = vpop.f32.mrb[1].mxu0  ;;  %v731_v33 = vld [vmem:[#allocation3] sm:$0xff] }
 0x13a   : > { %v684_v36 = vadd.f32 %v666_v32, %v638_v35  ;;  %v733_v35 = vld [vmem:[#allocation3 + $0x10] sm:$0xff] }
 0x13b   : > { %v691_v37 = vmul.f32 0.5, %v683_v34 }
 0x13c   : > { %v692_v39 = vmul.f32 0.5, %v684_v36  ;;  %v642_v40 = vpop.f32.mrb[2].mxu0 }
 0x13d   : > { %1292 = vtanh.f32 %v691_v37  ;;  %v685_v41 = vadd.f32 %v671_v38, %v642_v40  ;;  %v644_v42 = vpop.f32.mrb[3].mxu0  ;;  %v742_v37 = vpop.permute.xlu0 %741 }
 0x13e   : > { %1294 = vtanh.f32 %v692_v39  ;;  %v686_v44 = vadd.f32 %v671_v38, %v644_v42 }
 0x13f   : > { %v693_v45 = vmul.f32 0.5, %v685_v41 }
 0x140   : > { %v694_v46 = vmul.f32 0.5, %v686_v44  ;;  %v648_v47 = vpop.f32.mrb[4].mxu0 }
 0x141   : > { %1296 = vtanh.f32 %v693_v45  ;;  %v687_v48 = vadd.f32 %v676_v43, %v648_v47  ;;  %v650_v49 = vpop.f32.mrb[5].mxu0 }
 0x142   : > { %1298 = vtanh.f32 %v694_v46  ;;  %v688_v50 = vadd.f32 %v676_v43, %v650_v49  ;;  %v747_v43 = vpop.permute.xlu1 %746 }
 0x143   : > { %v695_v51 = vmul.f32 0.5, %v687_v48 }
 0x144   : > { %v696_v53 = vmul.f32 0.5, %v688_v50  ;;  %v654_v54 = vpop.f32.mrb[6].mxu0 }
 0x145   : > { %1300 = vtanh.f32 %v695_v51  ;;  %v689_v55 = vadd.f32 %v681_v52, %v654_v54  ;;  %v656_v56 = vpop.f32.mrb[7].mxu0 }
 0x146   : > { %1302 = vtanh.f32 %v696_v53  ;;  %v690_v57 = vadd.f32 %v681_v52, %v656_v56 }
 0x147   : > { %v1293_v58 = vpop.eup %1292  ;;  %v697_v59 = vmul.f32 0.5, %v689_v55 }
 0x148   : > { %v1295_v60 = vpop.eup %1294  ;;  %v707_v61 = vmul.f32 0.5, %v1293_v58  ;;  %v698_v62 = vmul.f32 0.5, %v690_v57 }
 0x149   : > { %1304 = vtanh.f32 %v697_v59  ;;  %v708_v63 = vmul.f32 0.5, %v1295_v60 }
 0x14a   : > { %1306 = vtanh.f32 %v698_v62  ;;  %v715_v2 = vadd.f32 0.5, %v707_v61 }
 0x14b   : > { %v1297_v0 = vpop.eup %1296  ;;  %v716_v6 = vadd.f32 0.5, %v708_v63 }
 0x14c   : > { %v1299_v1 = vpop.eup %1298  ;;  %v709_v3 = vmul.f32 0.5, %v1297_v0  ;;  %v723_v11 = vmul.f32 %v715_v2, %v683_v34  ;;  %v732_v34 = vld [vmem:[#allocation3 + $0x8] sm:$0xff] }
 0x14d   : > { %v710_v5 = vmul.f32 0.5, %v1299_v1  ;;  %v724_v15 = vmul.f32 %v716_v6, %v684_v36  ;;  %v734_v36 = vld [vmem:[#allocation3 + $0x18] sm:$0xff] }
 0x14e   : > { %v717_v7 = vadd.f32 0.5, %v709_v3 }
 0x14f   : > { %v1301_v8 = vpop.eup %1300  ;;  %v718_v9 = vadd.f32 0.5, %v710_v5 }
 0x150   : > { %v1303_v10 = vpop.eup %1302  ;;  %v725_v12 = vmul.f32 %v717_v7, %v685_v41  ;;  %v711_v13 = vmul.f32 0.5, %v1301_v8 }
 0x151   : > { %v712_v14 = vmul.f32 0.5, %v1303_v10  ;;  %v726_v16 = vmul.f32 %v718_v9, %v686_v44 }
 0x152   : > { %v1208_v17 = vpack.c.bf16 %v725_v12, %v723_v11  ;;  %v719_v21 = vadd.f32 0.5, %v711_v13 }
 0x153   : > { %v1305_v18 = vpop.eup %1304  ;;  %v1206_v19 = vpack.c.bf16 %v726_v16, %v724_v15  ;;  %v720_v23 = vadd.f32 0.5, %v712_v14 }
 0x154   : > { %v1307_v20 = vpop.eup %1306  ;;  %v713_v22 = vmul.f32 0.5, %v1305_v18  ;;  %v727_v27 = vmul.f32 %v719_v21, %v687_v48 }
 0x155   : > { %v714_v24 = vmul.f32 0.5, %v1307_v20  ;;  %1207 = vmatprep.subr.bf16.mxu1 %v1206_v19  ;;  %v728_v29 = vmul.f32 %v720_v23, %v688_v50  ;;  %v752_v50 = vpop.permute.xlu0 %751 }
 0x156   : > { %v721_v25 = vadd.f32 0.5, %v713_v22  ;;  %1209 = vmatpush1.bf16.msra.mxu1 %v1208_v17 }
 0x157   : > { %v722_v26 = vadd.f32 0.5, %v714_v24 }
 0x158   : > { %v729_v28 = vmul.f32 %v721_v25, %v689_v55 }
 0x159   : > { %v730_v30 = vmul.f32 %v722_v26, %v690_v57  ;;  %v757_v57 = vpop.permute.xlu1 %756 }
 0x15a   : > { %v1212_v31 = vpack.c.bf16 %v729_v28, %v727_v27 }
 0x15b   : > { %v1210_v32 = vpack.c.bf16 %v730_v30, %v728_v29 }
 0x15d   : > { %1211 = vmatprep.subr.bf16.mxu1 %v1210_v32 }
 0x15e   : > { %1213 = vmatpush1.bf16.msra.mxu1 %v1212_v31 }
 0x161   : > { %1185 = vmatmul.mubr.msk.f32.vlgmr.msra.gmra.mrb[0].mxu1 %vm759_vm3, %v731_v33 }
 0x162   : > { %842 = vmatprep.mubr.f32.mxu1 %v1459_v4 }
 0x165   : > { %1186 = vmatmul.mubr.msk.f32.gmra.mrb[2].mxu1 %vm759_vm3, %v732_v34 }
 0x166   : > { %848 = vmatprep.mubr.f32.mxu1 %v1459_v4 }
 0x169   : > { %1187 = vmatmul.mubr.msk.f32.gmra.mrb[4].mxu1 %vm759_vm3, %v733_v35 }
 0x16a   : > { %854 = vmatprep.mubr.f32.mxu1 %v1459_v4 }
 0x16d   : > { %1188 = vmatmul.mubr.msk.f32.gmra.mrb[6].mxu1 %vm759_vm3, %v734_v36 }
 0x16e   : > { %985 = vmatprep.mubr.f32.mxu1 %v1459_v4 }
 0x234   : > { %v838_v38 = vpop.f32.mrb[0].mxu1 }
 0x235   : > { %v839_v39 = vadd.f32 %v838_v38, %v742_v37  ;;  %v840_v40 = vpop.f32.mrb[1].mxu1  ;;  %v901_v38 = vld [vmem:[%s1802_s7] sm:$0xff] }
 0x236   : > { %v841_v41 = vadd.f32 %v840_v40, %v742_v37  ;;  %v908_v40 = vpop.permute.xlu1 %907 }
 0x237   : > { %v861_v42 = vmul.f32 0.5, %v839_v39 }
 0x238   : > { %v862_v44 = vmul.f32 0.5, %v841_v41  ;;  %v844_v45 = vpop.f32.mrb[2].mxu1 }
 0x239   : > { %1308 = vtanh.f32 %v861_v42  ;;  %v845_v46 = vadd.f32 %v844_v45, %v747_v43  ;;  %v846_v47 = vpop.f32.mrb[3].mxu1 }
 0x23a   : > { %1310 = vtanh.f32 %v862_v44  ;;  %v847_v48 = vadd.f32 %v846_v47, %v747_v43 }
 0x23b   : > { %v863_v49 = vmul.f32 0.5, %v845_v46 }
 0x23c   : > { %v864_v51 = vmul.f32 0.5, %v847_v48  ;;  %v850_v52 = vpop.f32.mrb[4].mxu1 }
 0x23d   : > { %1312 = vtanh.f32 %v863_v49  ;;  %v851_v53 = vadd.f32 %v850_v52, %v752_v50  ;;  %v852_v54 = vpop.f32.mrb[5].mxu1 }
 0x23e   : > { %1314 = vtanh.f32 %v864_v51  ;;  %v853_v55 = vadd.f32 %v852_v54, %v752_v50 }
 0x23f   : > { %v865_v56 = vmul.f32 0.5, %v851_v53 }
 0x240   : > { %v866_v58 = vmul.f32 0.5, %v853_v55  ;;  %v856_v59 = vpop.f32.mrb[6].mxu1 }
 0x241   : > { %1316 = vtanh.f32 %v865_v56  ;;  %v857_v60 = vadd.f32 %v856_v59, %v757_v57  ;;  %v858_v61 = vpop.f32.mrb[7].mxu1 }
 0x242   : > { %1318 = vtanh.f32 %v866_v58  ;;  %v859_v62 = vadd.f32 %v858_v61, %v757_v57 }
 0x243   : > { %v1309_v63 = vpop.eup %1308  ;;  %v867_v0 = vmul.f32 0.5, %v857_v60 }
 0x244   : > { %v1311_v1 = vpop.eup %1310  ;;  %v877_v2 = vmul.f32 0.5, %v1309_v63  ;;  %v868_v3 = vmul.f32 0.5, %v859_v62 }
 0x245   : > { %v878_v5 = vmul.f32 0.5, %v1311_v1  ;;  %1320 = vtanh.f32 %v867_v0 }
 0x246   : > { %1322 = vtanh.f32 %v868_v3  ;;  %v885_v8 = vadd.f32 0.5, %v877_v2 }
 0x247   : > { %v1313_v6 = vpop.eup %1312  ;;  %v886_v10 = vadd.f32 0.5, %v878_v5 }
 0x248   : > { %v1315_v7 = vpop.eup %1314  ;;  %v879_v9 = vmul.f32 0.5, %v1313_v6  ;;  %v893_v16 = vmul.f32 %v885_v8, %v839_v39  ;;  %v902_v39 = vld [vmem:[%s1802_s7 + $0x8] sm:$0xff] }
 0x249   : > { %v880_v11 = vmul.f32 0.5, %v1315_v7  ;;  %v894_v19 = vmul.f32 %v886_v10, %v841_v41 }
 0x24a   : > { %v887_v12 = vadd.f32 0.5, %v879_v9 }
 0x24b   : > { %v1317_v13 = vpop.eup %1316  ;;  %v888_v14 = vadd.f32 0.5, %v880_v11 }
 0x24c   : > { %v1319_v15 = vpop.eup %1318  ;;  %v895_v17 = vmul.f32 %v887_v12, %v845_v46  ;;  %v881_v18 = vmul.f32 0.5, %v1317_v13 }
 0x24d   : > { %v896_v20 = vmul.f32 %v888_v14, %v847_v48  ;;  %v882_v21 = vmul.f32 0.5, %v1319_v15 }
 0x24e   : > { %v1216_v22 = vpack.c.bf16 %v895_v17, %v893_v16  ;;  %v889_v26 = vadd.f32 0.5, %v881_v18 }
 0x24f   : > { %v1321_v23 = vpop.eup %1320  ;;  %v1214_v24 = vpack.c.bf16 %v896_v20, %v894_v19  ;;  %v890_v28 = vadd.f32 0.5, %v882_v21 }
 0x250   : > { %v1323_v25 = vpop.eup %1322  ;;  %v883_v27 = vmul.f32 0.5, %v1321_v23  ;;  %v897_v32 = vmul.f32 %v889_v26, %v851_v53 }
 0x251   : > { %v884_v29 = vmul.f32 0.5, %v1323_v25  ;;  %1215 = vmatprep.subr.bf16.mxu1 %v1214_v24  ;;  %v898_v34 = vmul.f32 %v890_v28, %v853_v55 }
 0x252   : > { %v891_v30 = vadd.f32 0.5, %v883_v27  ;;  %1217 = vmatpush1.bf16.msra.mxu1 %v1216_v22 }
 0x253   : > { %v892_v31 = vadd.f32 0.5, %v884_v29 }
 0x254   : > { %v899_v33 = vmul.f32 %v891_v30, %v857_v60 }
 0x255   : > { %v900_v35 = vmul.f32 %v892_v31, %v859_v62 }
 0x256   : > { %v1220_v36 = vpack.c.bf16 %v899_v33, %v897_v32 }
 0x257   : > { %v1218_v37 = vpack.c.bf16 %v900_v35, %v898_v34 }
 0x259   : > { %1219 = vmatprep.subr.bf16.mxu1 %v1218_v37 }
 0x25a   : > { %1221 = vmatpush1.bf16.msra.mxu1 %v1220_v36 }
 0x25d   : > { %1189 = vmatmul.mubr.msk.f32.vlgmr.msra.gmra.mrb[8].mxu1 %vm759_vm3, %v901_v38 }
 0x25e   : > { %991 = vmatprep.mubr.f32.mxu1 %v1459_v4  ;;  %v913_v4 = vpop.permute.xlu0 %912 }
 0x261   : > { %1190 = vmatmul.mubr.msk.f32.gmra.mrb[10].mxu1 %vm759_vm3, %v902_v39 }
 0x330   : > { %v987_v41 = vpop.f32.mrb[8].mxu1 }
 0x331   : > { %v988_v42 = vadd.f32 %v987_v41, %v908_v40  ;;  %v989_v43 = vpop.f32.mrb[9].mxu1 }
 0x332   : > { %v990_v44 = vadd.f32 %v989_v43, %v908_v40 }
 0x333   : > { %998 = vst [vmem:[%s418_s21] sm:$0xff] %v988_v42 }
 0x334   : > { %999 = vst [vmem:[%s418_s21 + $0x8] sm:$0xff] %v990_v44  ;;  %v993_v45 = vpop.f32.mrb[10].mxu1 }
 0x335   : > { %v994_v46 = vadd.f32 %v993_v45, %v913_v4  ;;  %v995_v47 = vpop.f32.mrb[11].mxu1 }
 0x336   : > { %1369 = shalt.err (!%p1366_p13)
}
 0x337   : > { %s1370_s20 = scalar_lea.hbm %s1719_s25, 256  ;;  %s1374_s19 = scalar_lea.hbm %s1804_s9, 1024 }
 0x338   : > { %p1371_p1 = scmp.ne.s32.totalorder %s1719_s25, %s1370_s20  ;;  %p1375_p6 = scmp.lt.u32.totalorder %s1719_s25, %s1804_s9 }
 0x339   : > { %p1376_p10 = scmp.lt.u32.totalorder %s1374_s19, %s1370_s20  ;;  %p1378_p12 = scmp.lt.u32.totalorder %s1370_s20, %s1719_s25 }
 0x33a   : > { %p1372_p3 = pnand %p1371_p1, %p1824_p0 }
 0x33b   : > { %p1377_p11 = por %p1376_p10, %p1375_p6 }
 0x33c   : > { %p1373_p5 = pneg %p1372_p3 }
 0x33d   : > { %p1379_p2 = por %p1378_p12, %p1377_p11 }
 0x33f   : > { %p1380_p4 = pnand %p1379_p2, %p1373_p5 }
 0x341   : > { %1383 = shalt.err (!%p1380_p4)
}
 0x342   : > { %1234 = dma.vmem_to_hbm [thread:$0]  (%p1824_p0), %s1721_s27, 256, %s1719_s25, %s1007_s28   ;;  %v996_v48 = vadd.f32 %v995_v47, %v913_v4  ;;  %v1000_v49 = vmul.f32 1.442695, %v994_v46 }
 0x343   : > { %s425_s26 = scalar_lea.vmem [#allocation7], %s1171_s22  ;;  %s1752_s29 = scalar_lea.hbm %s1805_s10, %s1200_s12 }
 0x344   : > { %v1002_v50 = vmul.f32 1.442695, %v996_v48  ;;  %1324 = vpow2.f32 %v1000_v49  ;;  %s1040_s18 = sshll.u32 %s425_s26, 4  ;;  %s1012_s27 = scalar_lea.sflag [#allocation8], %s1611_s23  ;;  %s1754_s18 = int_to_ptr.vmem [resolvable:$true] %s1040_s18 }
 0x345   : > { %s1384_s25 = scalar_lea.vmem %s1754_s18, 256  ;;  %s1462_s17 = smov [#allocation7]  }
 0x346   : > { %1326 = vpow2.f32 %v1002_v50  ;;  %p1385_p7 = scmp.ne.s32.totalorder %s1754_s18, %s1384_s25  ;;  %s1388_s22 = sshll.u32 %s1462_s17, 4  ;;  %s1389_s22 = int_to_ptr.vmem [resolvable:$false] %s1388_s22 }
 0x347   : > { %s1390_s28 = scalar_lea.vmem %s1389_s22, 512  ;;  %p1391_p13 = scmp.lt.s32.totalorder %s1754_s18, %s1389_s22 }
 0x348   : > { %p1386_p8 = pnand %p1385_p7, %p1824_p0  ;;  %p1392_p1 = scmp.lt.s32.totalorder %s1390_s28, %s1384_s25 }
 0x34a   : > { %p1387_p9 = pneg %p1386_p8  ;;  %p1393_p3 = por %p1392_p1, %p1391_p13 }
 0x34c   : > { %p1394_p5 = pnand %p1393_p3, %p1387_p9 }
 0x34e   : > { %v1325_v51 = vpop.eup %1324 }
 0x34f   : > { %1004 = vst [vmem:[%s425_s26] sm:$0xff] %v1325_v51 }
 0x350   : > { %v1327_v52 = vpop.eup %1326 }
 0x351   : > { %1005 = vst [vmem:[%s425_s26 + $0x8] sm:$0xff] %v1327_v52 }
 0x352   : > { %1397 = shalt.err (!%p1394_p5)
}
 0x353   : > { %s1398_s23 = scalar_lea.hbm %s1752_s29, 256  ;;  %s1402_s30 = scalar_lea.hbm %s1805_s10, 1024 }
 0x354   : > { %p1399_p6 = scmp.ne.s32.totalorder %s1752_s29, %s1398_s23  ;;  %p1403_p12 = scmp.lt.u32.totalorder %s1752_s29, %s1805_s10 }
 0x355   : > { %p1404_p2 = scmp.lt.u32.totalorder %s1402_s30, %s1398_s23  ;;  %p1406_p7 = scmp.lt.u32.totalorder %s1398_s23, %s1752_s29 }
 0x356   : > { %p1400_p10 = pnand %p1399_p6, %p1824_p0 }
 0x357   : > { %p1405_p4 = por %p1404_p2, %p1403_p12 }
 0x358   : > { %p1401_p11 = pneg %p1400_p10 }
 0x359   : > { %p1407_p8 = por %p1406_p7, %p1405_p4 }
 0x35b   : > { %p1408_p9 = pnand %p1407_p8, %p1401_p11 }
 0x35d   : > { %1411 = shalt.err (!%p1408_p9)
}
 0x35e   : > { %1235 = dma.vmem_to_hbm [thread:$0]  (%p1824_p0), %s1754_s18, 256, %s1752_s29, %s1012_s27  }
 0x35f PF: > { %s1825_s20 = sld [smem:[#allocation14_spill]]  ;;  %p1251_p13 = scmp.ge.s32.totalorder %s1454_s16, 2 }
 0x360   : > { %s1052_s21 = sand.u32 1, %s1442_s13  }
 0x361   : > { %s1053_s25 = scalar_lea.sflag [#allocation5], %s1052_s21 }
 0x365   : > { %p1826_p1 = scmp.ne.s32.totalorder %s1825_s20, 0 }
 0x367   : > { %p1243_p3 = pnand %p1251_p13, %p1826_p1 }
 0x369   : > { %1433 = dma.done.wait (!%p1243_p3), %s1053_s25, 256  }
 0x36a   : > { %1435 = vsyncadd (!%p1243_p3), %s1053_s25, 4294967040  ;;  %s1062_s17 = scalar_lea.sflag [#allocation8], %s1052_s21 }
 0x36b   : > { %1437 = dma.done.wait (!%p1243_p3), %s1062_s17, 256  }
 0x36c   : > { %1439 = vsyncadd (!%p1243_p3), %s1062_s17, 4294967040  ;;  %s1827_s16 = sld [smem:[#allocation12_spill]]  ;;  %s1828_s24 = sld [smem:[#allocation13_spill]] }
 0x36d   : > { %s1829_s13 = smov %s1446_s14  ;;  %s1830_s14 = smov %s1450_s15 }
 0x372   : > { %p25_p0 = scmp.ge.s32.totalorder %s1827_s16, 6   ;;  %s1831_s15 = smov %s1828_s24 }
 0x374   :  { %27 = sbr.rel (!%p25_p0) target bundleno = 6 (0x6), region = 144 }
 0x37b   :  { %1067 = vsyncpa [#allocation4], 1 }
 0x37c   :  { %1069 = vsyncpa [#allocation4 + $0x1], 1 }
 0x37d   :  { %1070 = vsyncpa [#allocation5], 1 }
 0x37e   :  { %1072 = vsyncpa [#allocation5 + $0x1], 1 }
 0x37f   :  { %1073 = vsyncpa [#allocation8], 1 }
 0x380   :  { %1075 = vsyncpa [#allocation8 + $0x1], 1 }

</bundles_post_ra>
